<compile_context>
chip_gen: v5e
topology: v5e:2x2
jax: 0.10.0
libtpu: 0.0.40
codegen_flags: <defaults>
</compile_context>

<pallas_src>
import functools

import jax
import jax.numpy as jnp
import numpy as np
from jax.experimental import pallas as pl
from jax.experimental.pallas import tpu as pltpu

K = 3        # kernel_size for both the transposed conv and DoubleConv
STRIDE = 2   # ConvTranspose1d stride
EPS = 1e-5   # BatchNorm eps


def _conv3(w_ref, x, width):
    """3-tap 'valid' conv of a lane-dense slab -> (C_out, width-2)."""
    y0 = jnp.dot(w_ref[0], x, preferred_element_type=jnp.float32)
    y1 = jnp.dot(w_ref[1], x, preferred_element_type=jnp.float32)
    y2 = jnp.dot(w_ref[2], x, preferred_element_type=jnp.float32)
    return y0[:, 0:width - 2] + y1[:, 1:width - 1] + y2[:, 2:width]


def _bn_relu(a, g, b, cnt):
    """Training-mode BatchNorm1d (+ReLU) over a pre-masked slab."""
    mean = jnp.sum(a, axis=-1, keepdims=True) / cnt
    var = jnp.sum(a * a, axis=-1, keepdims=True) / cnt - mean * mean
    inv = jax.lax.rsqrt(var + EPS)
    return jnp.maximum((a - mean) * inv * g + b, 0.0)


def up_kernel(x1d_ref, x2_ref, masks_ref, wup_ref, bup_ref,
              w1_ref, g1_ref, b1_ref, w2_ref, g2_ref, b2_ref,
              out_ref, cat_ref, h_ref, *, N, L2, pad_l, L_up, aligned):
    C_in = cat_ref.shape[0]
    C_half = x2_ref.shape[0]
    C_up = C_in - C_half
    C_mid = h_ref.shape[0]
    Lseg = L2 + 2
    W = N * Lseg
    cnt = float(N * L2)

    core = masks_ref[0:1, 1:W - 1]      # (1, W-2): 1 at real-signal positions
    bup = bup_ref[...]                  # (C_up, 1)

    # ---- Stage 1: ConvTranspose1d == full conv over the zero-dilated slab ----
    W1 = x1d_ref.shape[1]
    r = _conv3(wup_ref, x1d_ref[...], W1)        # (C_up, W1-2), bias not yet added

    # ---- concat([x2, F.pad(up(x1))], channel axis) via row-range stores ----
    cat_ref[0:C_half, :] = x2_ref[...]           # x2 slab is pre-padded (conv pad=1)
    if aligned:
        # x1d is laid out in cat-slab coordinates: r is already column-aligned,
        # so a single masked store places upsample + bias + F.pad for ALL batches.
        ymask = masks_ref[1:2, 0:W - 2]
        cat_ref[C_half:C_in, 0:W - 2] = (r + bup) * ymask
        cat_ref[C_half:C_in, W - 2:W] = jnp.zeros((C_up, 2), jnp.float32)
    else:
        # General (cropping) fallback: per-batch lane-slice stores.
        cat_ref[C_half:C_in, :] = jnp.zeros((C_up, W), jnp.float32)
        Lseg1 = W1 // N
        j0 = max(0, pad_l)
        j1 = min(L2, pad_l + L_up)
        if j1 > j0:
            u0 = j0 - pad_l
            for n in range(N):
                cat_ref[C_half:C_in,
                        n * Lseg + 1 + j0:n * Lseg + 1 + j1] = (
                    r[:, n * Lseg1 + u0:n * Lseg1 + u0 + (j1 - j0)] + bup)

    # ---- Stage 2: Conv1d -> BatchNorm1d (batch stats) -> ReLU ----
    a1 = _conv3(w1_ref, cat_ref[...], W) * core
    h1 = _bn_relu(a1, g1_ref[...], b1_ref[...], cnt) * core
    h_ref[:, 1:W - 1] = h1
    h_ref[:, 0:1] = jnp.zeros((C_mid, 1), jnp.float32)
    h_ref[:, W - 1:W] = jnp.zeros((C_mid, 1), jnp.float32)

    # ---- Stage 3: Conv1d -> BatchNorm1d (batch stats) -> ReLU ----
    a2 = _conv3(w2_ref, h_ref[...], W) * core
    o = _bn_relu(a2, g2_ref[...], b2_ref[...], cnt)
    out_ref[:, 1:W - 1] = o.astype(out_ref.dtype)
    out_ref[:, 0:1] = jnp.zeros((out_ref.shape[0], 1), out_ref.dtype)
    out_ref[:, W - 1:W] = jnp.zeros((out_ref.shape[0], 1), out_ref.dtype)


def up_forward(x1, x2, params):
    """x1: (N, C_in, L1), x2: (N, C_in//2, L2) -> (N, C_out, L2)."""
    wt, bt, w1, g1, b1, w2, g2, b2 = params
    N, C_in, L1 = x1.shape
    _, C_half, L2 = x2.shape
    assert C_half == C_in // 2
    C_mid = w1.shape[0]
    C_out = w2.shape[0]

    Ld = (L1 - 1) * STRIDE + 1          # zero-dilated x1 length
    L_up = Ld + K - 1                   # ConvTranspose1d output length
    diff = L2 - L_up
    pad_l = diff // 2
    pad_r = diff - pad_l
    Lseg = L2 + 2                       # DoubleConv per-batch segment (pad=1)
    W = N * Lseg
    aligned = (pad_l >= 0) and (pad_r >= 0)

    x1f = x1.astype(jnp.float32)
    if aligned:
        # Place dilated x1 so that the stage-1 tap combine lands directly at
        # the F.pad'ed positions of the cat slab: xdil[j] at column j+3+pad_l.
        off = (K - 1) + 1 + pad_l
        x1d = jnp.zeros((N, C_in, Lseg), jnp.float32)
        x1d = x1d.at[:, :, off:off + Ld:STRIDE].set(x1f)
        x1d_slab = x1d.transpose(1, 0, 2).reshape(C_in, W)
    else:
        Lseg1 = Ld + 2 * (K - 1)        # full-conv padding per batch segment
        x1d = jnp.zeros((N, C_in, Lseg1), jnp.float32)
        x1d = x1d.at[:, :, K - 1:K - 1 + Ld:STRIDE].set(x1f)
        x1d_slab = x1d.transpose(1, 0, 2).reshape(C_in, N * Lseg1)

    x2p = jnp.pad(x2.astype(jnp.float32), ((0, 0), (0, 0), (1, 1)))
    x2_slab = x2p.transpose(1, 0, 2).reshape(C_half, W)

    # Masks (wrapper-side layout plumbing): row 0 = BN/core mask, row 1 = valid
    # window of the upsampled-x1 contribution (used only on the aligned path).
    pos = jnp.arange(W, dtype=jnp.int32) % Lseg
    core = ((pos >= 1) & (pos <= L2)).astype(jnp.float32)
    if aligned:
        yvalid = ((pos >= 1 + pad_l) & (pos <= pad_l + L_up)).astype(jnp.float32)
    else:
        yvalid = jnp.zeros((W,), jnp.float32)
    masks = jnp.stack([core, yvalid], axis=0)   # (2, W)

    # Tap-major weights: w[k] is a plain 2-D MXU operand.
    wup = jnp.flip(wt, axis=2).transpose(2, 1, 0).astype(jnp.float32)  # (K, C_half, C_in)
    w1p = w1.transpose(2, 0, 1).astype(jnp.float32)                    # (K, C_mid,  C_in)
    w2p = w2.transpose(2, 0, 1).astype(jnp.float32)                    # (K, C_out,  C_mid)

    kern = functools.partial(up_kernel, N=N, L2=L2, pad_l=pad_l, L_up=L_up,
                             aligned=aligned)
    out_slab = pl.pallas_call(
        kern,
        out_shape=jax.ShapeDtypeStruct((C_out, W), jnp.float32),
        in_specs=[pl.BlockSpec(memory_space=pltpu.MemorySpace.VMEM)] * 11,
        out_specs=pl.BlockSpec(memory_space=pltpu.MemorySpace.VMEM),
        scratch_shapes=[pltpu.VMEM((C_in, W), jnp.float32),
                        pltpu.VMEM((C_mid, W), jnp.float32)],
        compiler_params=pltpu.CompilerParams(vmem_limit_bytes=32 << 20),
    )(x1d_slab, x2_slab, masks, wup,
      bt.reshape(C_half, 1).astype(jnp.float32),
      w1p, g1.reshape(C_mid, 1).astype(jnp.float32),
      b1.reshape(C_mid, 1).astype(jnp.float32),
      w2p, g2.reshape(C_out, 1).astype(jnp.float32),
      b2.reshape(C_out, 1).astype(jnp.float32))

    # lane-dense slab (C_out, N*(L2+2)) -> (N, C_out, L2)
    return out_slab.reshape(C_out, N, Lseg)[:, :, 1:1 + L2].transpose(1, 0, 2)


def ref_forward(x1, x2, params):
    """Pure-JAX reference of the torch forward (train-mode BatchNorm)."""
    wt, bt, w1, g1, b1, w2, g2, b2 = params
    L2 = x2.shape[2]

    w_eff = jnp.flip(wt, axis=2).transpose(1, 0, 2)  # (C_half, C_in, K)
    y = jax.lax.conv_general_dilated(
        x1, w_eff, window_strides=(1,), padding=[(K - 1, K - 1)],
        lhs_dilation=(STRIDE,), dimension_numbers=('NCH', 'OIH', 'NCH'))
    y = y + bt[None, :, None]

    diff = L2 - y.shape[2]
    pad_l = diff // 2
    pad_r = diff - pad_l
    lo = -pad_l if pad_l < 0 else 0
    hi = (y.shape[2] + pad_r) if pad_r < 0 else y.shape[2]
    y = y[:, :, lo:hi]
    y = jnp.pad(y, ((0, 0), (0, 0), (max(pad_l, 0), max(pad_r, 0))))
    x = jnp.concatenate([x2, y], axis=1)

    def conv(a, w):
        return jax.lax.conv_general_dilated(
            a, w, window_strides=(1,), padding=[(1, 1)],
            dimension_numbers=('NCH', 'OIH', 'NCH'))

    def bn_relu(a, g, b):
        mean = jnp.mean(a, axis=(0, 2), keepdims=True)
        var = jnp.mean((a - mean) ** 2, axis=(0, 2), keepdims=True)
        return jnp.maximum((a - mean) / jnp.sqrt(var + EPS) * g[None, :, None]
                           + b[None, :, None], 0.0)

    h = bn_relu(conv(x, w1), g1, b1)
    return bn_relu(conv(h, w2), g2, b2)


if __name__ == "__main__":
    key = jax.random.PRNGKey(0)
    ks = jax.random.split(key, 10)

    N = 2
    in_channels = 8          # C_in for x1
    out_channels = 8         # DoubleConv out (mid == out)
    C_half = in_channels // 2
    L1, L2 = 8, 20           # L_up = 2*L1 + 1 = 17, diff = 3 (pad 1 left, 2 right)

    x1 = jax.random.normal(ks[0], (N, in_channels, L1), jnp.float32)
    x2 = jax.random.normal(ks[1], (N, C_half, L2), jnp.float32)

    # parameters (same shapes as the torch module, deterministic synthetic init)
    wt = 0.1 * jax.random.normal(ks[2], (in_channels, C_half, K), jnp.float32)        # ConvTranspose1d.weight
    bt = 0.1 * jax.random.normal(ks[3], (C_half,), jnp.float32)                       # ConvTranspose1d.bias
    w1 = 0.1 * jax.random.normal(ks[4], (out_channels, in_channels, K), jnp.float32)  # Conv1d #1 (bias=False)
    g1 = 1.0 + 0.1 * jax.random.normal(ks[5], (out_channels,), jnp.float32)           # BN1 gamma
    b1 = 0.1 * jax.random.normal(ks[6], (out_channels,), jnp.float32)                 # BN1 beta
    w2 = 0.1 * jax.random.normal(ks[7], (out_channels, out_channels, K), jnp.float32) # Conv1d #2 (bias=False)
    g2 = 1.0 + 0.1 * jax.random.normal(ks[8], (out_channels,), jnp.float32)           # BN2 gamma
    b2 = 0.1 * jax.random.normal(ks[9], (out_channels,), jnp.float32)                 # BN2 beta
    params = (wt, bt, w1, g1, b1, w2, g2, b2)

    out = jax.block_until_ready(jax.jit(up_forward)(x1, x2, params))
    ref = ref_forward(x1, x2, params)
    np.testing.assert_allclose(np.asarray(out), np.asarray(ref), rtol=5e-4, atol=5e-4)

    # TODO(synk): running_mean/running_var updates (a training-mode side effect of
    # nn.BatchNorm1d) are not reproduced; only the forward output is.
    print("KERNEL_OK")
</pallas_src>

<mosaic_0001>
module attributes {stable_mosaic.version = 11 : i64} {
  func.func @up_kernel(%arg0: memref<8x44xf32, #tpu.memory_space<vmem>>, %arg1: memref<4x44xf32, #tpu.memory_space<vmem>>, %arg2: memref<2x44xf32, #tpu.memory_space<vmem>>, %arg3: memref<3x4x8xf32, #tpu.memory_space<vmem>>, %arg4: memref<4x1xf32, #tpu.memory_space<vmem>>, %arg5: memref<3x8x8xf32, #tpu.memory_space<vmem>>, %arg6: memref<8x1xf32, #tpu.memory_space<vmem>>, %arg7: memref<8x1xf32, #tpu.memory_space<vmem>>, %arg8: memref<3x8x8xf32, #tpu.memory_space<vmem>>, %arg9: memref<8x1xf32, #tpu.memory_space<vmem>>, %arg10: memref<8x1xf32, #tpu.memory_space<vmem>>, %arg11: memref<8x44xf32, #tpu.memory_space<vmem>>, %arg12: memref<8x44xf32, #tpu.memory_space<vmem>>, %arg13: memref<8x44xf32, #tpu.memory_space<vmem>>) attributes {dimension_semantics = [], scalar_prefetch = 0 : i64, scratch_operands = 2 : i64, tpu.core_type = #tpu.core_type<tc>} {
    %c0 = arith.constant 0 : index
    %c1 = arith.constant 1 : index
    %0 = vector.load %arg2[%c0, %c1] : memref<2x44xf32, #tpu.memory_space<vmem>>, vector<1x42xf32>
    %c0_0 = arith.constant 0 : index
    %c0_1 = arith.constant 0 : index
    %1 = vector.load %arg4[%c0_0, %c0_1] : memref<4x1xf32, #tpu.memory_space<vmem>>, vector<4x1xf32>
    %c0_2 = arith.constant 0 : index
    %c0_3 = arith.constant 0 : index
    %2 = vector.load %arg0[%c0_2, %c0_3] : memref<8x44xf32, #tpu.memory_space<vmem>>, vector<8x44xf32>
    %c0_4 = arith.constant 0 : index
    %c0_5 = arith.constant 0 : index
    %c0_6 = arith.constant 0 : index
    %3 = vector.load %arg3[%c0_4, %c0_5, %c0_6] : memref<3x4x8xf32, #tpu.memory_space<vmem>>, vector<1x4x8xf32>
    %4 = vector.shape_cast %3 : vector<1x4x8xf32> to vector<4x8xf32>
    %cst = arith.constant dense<0.000000e+00> : vector<4x44xf32>
    %5 = tpu.matmul %4, %2, %cst {dimension_numbers = #tpu.dot_dimension_numbers<[1], [0], [0], [1], [0, 0, 1, 1], [], []>} : vector<4x8xf32>, vector<8x44xf32>, vector<4x44xf32> -> vector<4x44xf32>
    %c1_7 = arith.constant 1 : index
    %c0_8 = arith.constant 0 : index
    %c0_9 = arith.constant 0 : index
    %6 = vector.load %arg3[%c1_7, %c0_8, %c0_9] : memref<3x4x8xf32, #tpu.memory_space<vmem>>, vector<1x4x8xf32>
    %7 = vector.shape_cast %6 : vector<1x4x8xf32> to vector<4x8xf32>
    %cst_10 = arith.constant dense<0.000000e+00> : vector<4x44xf32>
    %8 = tpu.matmul %7, %2, %cst_10 {dimension_numbers = #tpu.dot_dimension_numbers<[1], [0], [0], [1], [0, 0, 1, 1], [], []>} : vector<4x8xf32>, vector<8x44xf32>, vector<4x44xf32> -> vector<4x44xf32>
    %c2 = arith.constant 2 : index
    %c0_11 = arith.constant 0 : index
    %c0_12 = arith.constant 0 : index
    %9 = vector.load %arg3[%c2, %c0_11, %c0_12] : memref<3x4x8xf32, #tpu.memory_space<vmem>>, vector<1x4x8xf32>
    %10 = vector.shape_cast %9 : vector<1x4x8xf32> to vector<4x8xf32>
    %cst_13 = arith.constant dense<0.000000e+00> : vector<4x44xf32>
    %11 = tpu.matmul %10, %2, %cst_13 {dimension_numbers = #tpu.dot_dimension_numbers<[1], [0], [0], [1], [0, 0, 1, 1], [], []>} : vector<4x8xf32>, vector<8x44xf32>, vector<4x44xf32> -> vector<4x44xf32>
    %12 = vector.extract_strided_slice %5 {offsets = [0, 0], sizes = [4, 42], strides = [1, 1]} : vector<4x44xf32> to vector<4x42xf32>
    %13 = vector.extract_strided_slice %8 {offsets = [0, 1], sizes = [4, 42], strides = [1, 1]} : vector<4x44xf32> to vector<4x42xf32>
    %14 = arith.addf %12, %13 : vector<4x42xf32>
    %15 = vector.extract_strided_slice %11 {offsets = [0, 2], sizes = [4, 42], strides = [1, 1]} : vector<4x44xf32> to vector<4x42xf32>
    %16 = arith.addf %14, %15 : vector<4x42xf32>
    %c0_14 = arith.constant 0 : index
    %c0_15 = arith.constant 0 : index
    %17 = vector.load %arg1[%c0_14, %c0_15] : memref<4x44xf32, #tpu.memory_space<vmem>>, vector<4x44xf32>
    %c0_16 = arith.constant 0 : index
    %c0_17 = arith.constant 0 : index
    %18 = vector.load %arg12[%c0_16, %c0_17] : memref<8x44xf32, #tpu.memory_space<vmem>>, vector<4x44xf32>
    tpu.vector_store %arg12[%c0_16, %c0_17], %17 {strides = array<i32>} : memref<8x44xf32, #tpu.memory_space<vmem>>, vector<4x44xf32>,
    %c1_18 = arith.constant 1 : index
    %c0_19 = arith.constant 0 : index
    %19 = vector.load %arg2[%c1_18, %c0_19] : memref<2x44xf32, #tpu.memory_space<vmem>>, vector<1x42xf32>
    %20 = vector.broadcast %1 : vector<4x1xf32> to vector<4x42xf32>
    %21 = arith.addf %16, %20 : vector<4x42xf32>
    %22 = vector.broadcast %19 : vector<1x42xf32> to vector<4x42xf32>
    %23 = arith.mulf %21, %22 : vector<4x42xf32>
    %c4 = arith.constant 4 : index
    %c0_20 = arith.constant 0 : index
    %24 = vector.load %arg12[%c4, %c0_20] : memref<8x44xf32, #tpu.memory_space<vmem>>, vector<4x42xf32>
    tpu.vector_store %arg12[%c4, %c0_20], %23 {strides = array<i32>} : memref<8x44xf32, #tpu.memory_space<vmem>>, vector<4x42xf32>,
    %cst_21 = arith.constant 0.000000e+00 : f32
    %25 = vector.broadcast %cst_21 : f32 to vector<4x2xf32>
    %c4_22 = arith.constant 4 : index
    %c42 = arith.constant 42 : index
    %26 = vector.load %arg12[%c4_22, %c42] : memref<8x44xf32, #tpu.memory_space<vmem>>, vector<4x2xf32>
    tpu.vector_store %arg12[%c4_22, %c42], %25 {strides = array<i32>} : memref<8x44xf32, #tpu.memory_space<vmem>>, vector<4x2xf32>,
    %c0_23 = arith.constant 0 : index
    %c0_24 = arith.constant 0 : index
    %27 = vector.load %arg12[%c0_23, %c0_24] : memref<8x44xf32, #tpu.memory_space<vmem>>, vector<8x44xf32>
    %c0_25 = arith.constant 0 : index
    %c0_26 = arith.constant 0 : index
    %c0_27 = arith.constant 0 : index
    %28 = vector.load %arg5[%c0_25, %c0_26, %c0_27] : memref<3x8x8xf32, #tpu.memory_space<vmem>>, vector<1x8x8xf32>
    %29 = vector.shape_cast %28 : vector<1x8x8xf32> to vector<8x8xf32>
    %cst_28 = arith.constant dense<0.000000e+00> : vector<8x44xf32>
    %30 = tpu.matmul %29, %27, %cst_28 {dimension_numbers = #tpu.dot_dimension_numbers<[1], [0], [0], [1], [0, 0, 1, 1], [], []>} : vector<8x8xf32>, vector<8x44xf32>, vector<8x44xf32> -> vector<8x44xf32>
    %c1_29 = arith.constant 1 : index
    %c0_30 = arith.constant 0 : index
    %c0_31 = arith.constant 0 : index
    %31 = vector.load %arg5[%c1_29, %c0_30, %c0_31] : memref<3x8x8xf32, #tpu.memory_space<vmem>>, vector<1x8x8xf32>
    %32 = vector.shape_cast %31 : vector<1x8x8xf32> to vector<8x8xf32>
    %cst_32 = arith.constant dense<0.000000e+00> : vector<8x44xf32>
    %33 = tpu.matmul %32, %27, %cst_32 {dimension_numbers = #tpu.dot_dimension_numbers<[1], [0], [0], [1], [0, 0, 1, 1], [], []>} : vector<8x8xf32>, vector<8x44xf32>, vector<8x44xf32> -> vector<8x44xf32>
    %c2_33 = arith.constant 2 : index
    %c0_34 = arith.constant 0 : index
    %c0_35 = arith.constant 0 : index
    %34 = vector.load %arg5[%c2_33, %c0_34, %c0_35] : memref<3x8x8xf32, #tpu.memory_space<vmem>>, vector<1x8x8xf32>
    %35 = vector.shape_cast %34 : vector<1x8x8xf32> to vector<8x8xf32>
    %cst_36 = arith.constant dense<0.000000e+00> : vector<8x44xf32>
    %36 = tpu.matmul %35, %27, %cst_36 {dimension_numbers = #tpu.dot_dimension_numbers<[1], [0], [0], [1], [0, 0, 1, 1], [], []>} : vector<8x8xf32>, vector<8x44xf32>, vector<8x44xf32> -> vector<8x44xf32>
    %37 = vector.extract_strided_slice %30 {offsets = [0, 0], sizes = [8, 42], strides = [1, 1]} : vector<8x44xf32> to vector<8x42xf32>
    %38 = vector.extract_strided_slice %33 {offsets = [0, 1], sizes = [8, 42], strides = [1, 1]} : vector<8x44xf32> to vector<8x42xf32>
    %39 = arith.addf %37, %38 : vector<8x42xf32>
    %40 = vector.extract_strided_slice %36 {offsets = [0, 2], sizes = [8, 42], strides = [1, 1]} : vector<8x44xf32> to vector<8x42xf32>
    %41 = arith.addf %39, %40 : vector<8x42xf32>
    %42 = vector.broadcast %0 : vector<1x42xf32> to vector<8x42xf32>
    %43 = arith.mulf %41, %42 : vector<8x42xf32>
    %c0_37 = arith.constant 0 : index
    %c0_38 = arith.constant 0 : index
    %44 = vector.load %arg6[%c0_37, %c0_38] : memref<8x1xf32, #tpu.memory_space<vmem>>, vector<8x1xf32>
    %c0_39 = arith.constant 0 : index
    %c0_40 = arith.constant 0 : index
    %45 = vector.load %arg7[%c0_39, %c0_40] : memref<8x1xf32, #tpu.memory_space<vmem>>, vector<8x1xf32>
    %cst_41 = arith.constant dense<0.000000e+00> : vector<8xf32>
    %46 = vector.multi_reduction <add>, %43, %cst_41 [1] : vector<8x42xf32> to vector<8xf32>
    %47 = vector.shape_cast %46 : vector<8xf32> to vector<8x1xf32>
    %cst_42 = arith.constant 4.000000e+01 : f32
    %48 = vector.broadcast %cst_42 : f32 to vector<8x1xf32>
    %49 = arith.divf %47, %48 : vector<8x1xf32>
    %50 = arith.mulf %43, %43 : vector<8x42xf32>
    %cst_43 = arith.constant dense<0.000000e+00> : vector<8xf32>
    %51 = vector.multi_reduction <add>, %50, %cst_43 [1] : vector<8x42xf32> to vector<8xf32>
    %52 = vector.shape_cast %51 : vector<8xf32> to vector<8x1xf32>
    %cst_44 = arith.constant 4.000000e+01 : f32
    %53 = vector.broadcast %cst_44 : f32 to vector<8x1xf32>
    %54 = arith.divf %52, %53 : vector<8x1xf32>
    %55 = arith.mulf %49, %49 : vector<8x1xf32>
    %56 = arith.subf %54, %55 : vector<8x1xf32>
    %cst_45 = arith.constant 9.99999974E-6 : f32
    %57 = vector.broadcast %cst_45 : f32 to vector<8x1xf32>
    %58 = arith.addf %56, %57 : vector<8x1xf32>
    %59 = math.rsqrt %58 : vector<8x1xf32>
    %60 = vector.broadcast %49 : vector<8x1xf32> to vector<8x42xf32>
    %61 = arith.subf %43, %60 : vector<8x42xf32>
    %62 = vector.broadcast %59 : vector<8x1xf32> to vector<8x42xf32>
    %63 = arith.mulf %61, %62 : vector<8x42xf32>
    %64 = vector.broadcast %44 : vector<8x1xf32> to vector<8x42xf32>
    %65 = arith.mulf %63, %64 : vector<8x42xf32>
    %66 = vector.broadcast %45 : vector<8x1xf32> to vector<8x42xf32>
    %67 = arith.addf %65, %66 : vector<8x42xf32>
    %cst_46 = arith.constant 0.000000e+00 : f32
    %68 = vector.broadcast %cst_46 : f32 to vector<8x42xf32>
    %69 = arith.maximumf %67, %68 : vector<8x42xf32>
    %70 = vector.broadcast %0 : vector<1x42xf32> to vector<8x42xf32>
    %71 = arith.mulf %69, %70 : vector<8x42xf32>
    %c0_47 = arith.constant 0 : index
    %c1_48 = arith.constant 1 : index
    %72 = vector.load %arg13[%c0_47, %c1_48] : memref<8x44xf32, #tpu.memory_space<vmem>>, vector<8x42xf32>
    tpu.vector_store %arg13[%c0_47, %c1_48], %71 {strides = array<i32>} : memref<8x44xf32, #tpu.memory_space<vmem>>, vector<8x42xf32>,
    %cst_49 = arith.constant 0.000000e+00 : f32
    %73 = vector.broadcast %cst_49 : f32 to vector<8x1xf32>
    %c0_50 = arith.constant 0 : index
    %c0_51 = arith.constant 0 : index
    %74 = vector.load %arg13[%c0_50, %c0_51] : memref<8x44xf32, #tpu.memory_space<vmem>>, vector<8x1xf32>
    tpu.vector_store %arg13[%c0_50, %c0_51], %73 {strides = array<i32>} : memref<8x44xf32, #tpu.memory_space<vmem>>, vector<8x1xf32>,
    %cst_52 = arith.constant 0.000000e+00 : f32
    %75 = vector.broadcast %cst_52 : f32 to vector<8x1xf32>
    %c0_53 = arith.constant 0 : index
    %c43 = arith.constant 43 : index
    %76 = vector.load %arg13[%c0_53, %c43] : memref<8x44xf32, #tpu.memory_space<vmem>>, vector<8x1xf32>
    tpu.vector_store %arg13[%c0_53, %c43], %75 {strides = array<i32>} : memref<8x44xf32, #tpu.memory_space<vmem>>, vector<8x1xf32>,
    %c0_54 = arith.constant 0 : index
    %c0_55 = arith.constant 0 : index
    %77 = vector.load %arg13[%c0_54, %c0_55] : memref<8x44xf32, #tpu.memory_space<vmem>>, vector<8x44xf32>
    %c0_56 = arith.constant 0 : index
    %c0_57 = arith.constant 0 : index
    %c0_58 = arith.constant 0 : index
    %78 = vector.load %arg8[%c0_56, %c0_57, %c0_58] : memref<3x8x8xf32, #tpu.memory_space<vmem>>, vector<1x8x8xf32>
    %79 = vector.shape_cast %78 : vector<1x8x8xf32> to vector<8x8xf32>
    %cst_59 = arith.constant dense<0.000000e+00> : vector<8x44xf32>
    %80 = tpu.matmul %79, %77, %cst_59 {dimension_numbers = #tpu.dot_dimension_numbers<[1], [0], [0], [1], [0, 0, 1, 1], [], []>} : vector<8x8xf32>, vector<8x44xf32>, vector<8x44xf32> -> vector<8x44xf32>
    %c1_60 = arith.constant 1 : index
    %c0_61 = arith.constant 0 : index
    %c0_62 = arith.constant 0 : index
    %81 = vector.load %arg8[%c1_60, %c0_61, %c0_62] : memref<3x8x8xf32, #tpu.memory_space<vmem>>, vector<1x8x8xf32>
    %82 = vector.shape_cast %81 : vector<1x8x8xf32> to vector<8x8xf32>
    %cst_63 = arith.constant dense<0.000000e+00> : vector<8x44xf32>
    %83 = tpu.matmul %82, %77, %cst_63 {dimension_numbers = #tpu.dot_dimension_numbers<[1], [0], [0], [1], [0, 0, 1, 1], [], []>} : vector<8x8xf32>, vector<8x44xf32>, vector<8x44xf32> -> vector<8x44xf32>
    %c2_64 = arith.constant 2 : index
    %c0_65 = arith.constant 0 : index
    %c0_66 = arith.constant 0 : index
    %84 = vector.load %arg8[%c2_64, %c0_65, %c0_66] : memref<3x8x8xf32, #tpu.memory_space<vmem>>, vector<1x8x8xf32>
    %85 = vector.shape_cast %84 : vector<1x8x8xf32> to vector<8x8xf32>
    %cst_67 = arith.constant dense<0.000000e+00> : vector<8x44xf32>
    %86 = tpu.matmul %85, %77, %cst_67 {dimension_numbers = #tpu.dot_dimension_numbers<[1], [0], [0], [1], [0, 0, 1, 1], [], []>} : vector<8x8xf32>, vector<8x44xf32>, vector<8x44xf32> -> vector<8x44xf32>
    %87 = vector.extract_strided_slice %80 {offsets = [0, 0], sizes = [8, 42], strides = [1, 1]} : vector<8x44xf32> to vector<8x42xf32>
    %88 = vector.extract_strided_slice %83 {offsets = [0, 1], sizes = [8, 42], strides = [1, 1]} : vector<8x44xf32> to vector<8x42xf32>
    %89 = arith.addf %87, %88 : vector<8x42xf32>
    %90 = vector.extract_strided_slice %86 {offsets = [0, 2], sizes = [8, 42], strides = [1, 1]} : vector<8x44xf32> to vector<8x42xf32>
    %91 = arith.addf %89, %90 : vector<8x42xf32>
    %92 = vector.broadcast %0 : vector<1x42xf32> to vector<8x42xf32>
    %93 = arith.mulf %91, %92 : vector<8x42xf32>
    %c0_68 = arith.constant 0 : index
    %c0_69 = arith.constant 0 : index
    %94 = vector.load %arg9[%c0_68, %c0_69] : memref<8x1xf32, #tpu.memory_space<vmem>>, vector<8x1xf32>
    %c0_70 = arith.constant 0 : index
    %c0_71 = arith.constant 0 : index
    %95 = vector.load %arg10[%c0_70, %c0_71] : memref<8x1xf32, #tpu.memory_space<vmem>>, vector<8x1xf32>
    %cst_72 = arith.constant dense<0.000000e+00> : vector<8xf32>
    %96 = vector.multi_reduction <add>, %93, %cst_72 [1] : vector<8x42xf32> to vector<8xf32>
    %97 = vector.shape_cast %96 : vector<8xf32> to vector<8x1xf32>
    %cst_73 = arith.constant 4.000000e+01 : f32
    %98 = vector.broadcast %cst_73 : f32 to vector<8x1xf32>
    %99 = arith.divf %97, %98 : vector<8x1xf32>
    %100 = arith.mulf %93, %93 : vector<8x42xf32>
    %cst_74 = arith.constant dense<0.000000e+00> : vector<8xf32>
    %101 = vector.multi_reduction <add>, %100, %cst_74 [1] : vector<8x42xf32> to vector<8xf32>
    %102 = vector.shape_cast %101 : vector<8xf32> to vector<8x1xf32>
    %cst_75 = arith.constant 4.000000e+01 : f32
    %103 = vector.broadcast %cst_75 : f32 to vector<8x1xf32>
    %104 = arith.divf %102, %103 : vector<8x1xf32>
    %105 = arith.mulf %99, %99 : vector<8x1xf32>
    %106 = arith.subf %104, %105 : vector<8x1xf32>
    %cst_76 = arith.constant 9.99999974E-6 : f32
    %107 = vector.broadcast %cst_76 : f32 to vector<8x1xf32>
    %108 = arith.addf %106, %107 : vector<8x1xf32>
    %109 = math.rsqrt %108 : vector<8x1xf32>
    %110 = vector.broadcast %99 : vector<8x1xf32> to vector<8x42xf32>
    %111 = arith.subf %93, %110 : vector<8x42xf32>
    %112 = vector.broadcast %109 : vector<8x1xf32> to vector<8x42xf32>
    %113 = arith.mulf %111, %112 : vector<8x42xf32>
    %114 = vector.broadcast %94 : vector<8x1xf32> to vector<8x42xf32>
    %115 = arith.mulf %113, %114 : vector<8x42xf32>
    %116 = vector.broadcast %95 : vector<8x1xf32> to vector<8x42xf32>
    %117 = arith.addf %115, %116 : vector<8x42xf32>
    %cst_77 = arith.constant 0.000000e+00 : f32
    %118 = vector.broadcast %cst_77 : f32 to vector<8x42xf32>
    %119 = arith.maximumf %117, %118 : vector<8x42xf32>
    %c0_78 = arith.constant 0 : index
    %c1_79 = arith.constant 1 : index
    %120 = vector.load %arg11[%c0_78, %c1_79] : memref<8x44xf32, #tpu.memory_space<vmem>>, vector<8x42xf32>
    tpu.vector_store %arg11[%c0_78, %c1_79], %119 {strides = array<i32>} : memref<8x44xf32, #tpu.memory_space<vmem>>, vector<8x42xf32>,
    %cst_80 = arith.constant 0.000000e+00 : f32
    %121 = vector.broadcast %cst_80 : f32 to vector<8x1xf32>
    %c0_81 = arith.constant 0 : index
    %c0_82 = arith.constant 0 : index
    %122 = vector.load %arg11[%c0_81, %c0_82] : memref<8x44xf32, #tpu.memory_space<vmem>>, vector<8x1xf32>
    tpu.vector_store %arg11[%c0_81, %c0_82], %121 {strides = array<i32>} : memref<8x44xf32, #tpu.memory_space<vmem>>, vector<8x1xf32>,
    %cst_83 = arith.constant 0.000000e+00 : f32
    %123 = vector.broadcast %cst_83 : f32 to vector<8x1xf32>
    %c0_84 = arith.constant 0 : index
    %c43_85 = arith.constant 43 : index
    %124 = vector.load %arg11[%c0_84, %c43_85] : memref<8x44xf32, #tpu.memory_space<vmem>>, vector<8x1xf32>
    tpu.vector_store %arg11[%c0_84, %c43_85], %123 {strides = array<i32>} : memref<8x44xf32, #tpu.memory_space<vmem>>, vector<8x1xf32>,
    return
  }
}

</mosaic_0001>

<bundles_post_ra>
// kernel: up_forward.1
= control target key start
LH: loop header
LB: loop body
LE: loop exit
PB: predicated region body
PF: predicated region fallthrough
CT: control target
= control target key end

     0   :  { %vm42_vm0 = vcmask 64512   ;;  %v459_v5 = vmov 0   ;;  %s460_s26 = smov 127   ;;  %vm127_vm1 = vcmask 355328   ;;  %vm138_vm2 = vcmask 338944   ;;  %s632_s0 = inlined_call_operand.vmem [shape: f32[8,44], index: 0, kind: input, shape index: {}]   ;;  %s633_s3 = inlined_call_operand.vmem [shape: f32[3,4,8], index: 3, kind: input, shape index: {}]   ;;  %s634_s4 = inlined_call_operand.vmem [shape: f32[4,1], index: 4, kind: input, shape index: {}]   ;;  %s635_s2 = inlined_call_operand.vmem [shape: f32[2,44], index: 2, kind: input, shape index: {}]   ;;  %s636_s1 = inlined_call_operand.vmem [shape: f32[4,44], index: 1, kind: input, shape index: {}]   ;;  %s637_s5 = inlined_call_operand.vmem [shape: f32[3,8,8], index: 5, kind: input, shape index: {}]   ;;  %s638_s6 = inlined_call_operand.vmem [shape: f32[8,1], index: 6, kind: input, shape index: {}]   ;;  %s639_s7 = inlined_call_operand.vmem [shape: f32[8,1], index: 7, kind: input, shape index: {}]   ;;  %s640_s9 = inlined_call_operand.vmem [shape: f32[8,1], index: 9, kind: input, shape index: {}]   ;;  %s641_s8 = inlined_call_operand.vmem [shape: f32[3,8,8], index: 8, kind: input, shape index: {}]   ;;  %s642_s10 = inlined_call_operand.vmem [shape: f32[8,1], index: 10, kind: input, shape index: {}]   ;;  %s643_s11 = inlined_call_operand.vmem [shape: f32[8,44], index: 11, kind: output, shape index: {}]  }
   0x1   :  { %v40_v0 = vld [vmem:[%s632_s0] sm:$0xff]  ;;  %v430_v2 = vld [vmem:[%s633_s3 + $0x8] sm:$0xf]  ;;  %448 = vset.pattern.permute.xlu1 %v459_v5  ;;  %449 = vset.pattern.permute.xlu2 %v459_v5  ;;  %vm140_vm3 = vcmask 355664   ;;  %v462_v18 = vmov 0.0   ;;  %v435_v20 = vld [vmem:[%s637_s5 + $0x10] sm:$0xff] }
   0x2   :  { %v428_v1 = vld [vmem:[%s633_s3 + $0x4] sm:$0xf]  ;;  %86 = vmatpush.msra.mxu1 %v40_v0  ;;  %111 = vmatpush.msra.mxu2 %v40_v0  ;;  %v41_v3 = vld [vmem:[%s633_s3] sm:$0xf]  ;;  %s461_s3 = smov 126   ;;  %v433_v19 = vld [vmem:[%s637_s5 + $0x8] sm:$0xff] }
   0x3   :  { %429 = vmatmul.msk.f32.vlgmr.msra.gmra.mxu1 %vm42_vm0, %v428_v1  ;;  %431 = vmatmul.msk.f32.vlgmr.msra.gmra.mxu2 %vm42_vm0, %v430_v2  ;;  %v39_v4 = vld [vmem:[%s634_s4] sm:$0xf]  ;;  %vm235_vm4 = vcmask 343040   ;;  %v463_v39 = vmov 40.0   ;;  %vm285_vm9 = vcmask 351240   ;;  %vm287_vm10 = vcmask 7168  }
   0x4   :  { %61 = vmatpush.msra.mxu0 %v40_v0  ;;  %132 = vperm.xlu1 %448, %v39_v4   ;;  %v126_v8 = vld [vmem:[%s636_s1] sm:$0xf]  ;;  %453 = vrcp.f32 %v463_v39  ;;  %vm289_vm11 = vcmask 359768  }
   0x5   :  { %427 = vmatmul.msk.f32.vlgmr.msra.gmra.mxu0 %vm42_vm0, %v41_v3  ;;  %450 = vset.pattern.permute.xlu0 %v459_v5  ;;  %128 = vst.msk [vmem:[#allocation2] sm:$0xf] %vm127_vm1, %v126_v8  ;;  %v451_v15 = vld [vmem:[%s635_s2 + $0x1] ss:$0 sm:$0xff]  ;;  %v452_v25 = vld [vmem:[%s635_s2] ss:$0 sm:$0xff] }
   0x6   :  { %v143_v22 = vld [vmem:[%s637_s5] sm:$0xff]  ;;  %v438_v5 = vld [vmem:[%s641_s8 + $0x8] sm:$0xff] }
   0x7   :  { %v233_v32 = vld [vmem:[%s638_s6] sm:$0xff]  ;;  %s464_s6 = smov 1  }
   0x8   :  { %v234_v37 = vld [vmem:[%s639_s7] sm:$0xff] }
   0x9   :  { %v377_v38 = vld [vmem:[%s640_s9] sm:$0xff] }
   0xa   :  { %v454_v40 = vpop.eup %453  ;;  %v292_v8 = vld [vmem:[%s641_s8] sm:$0xff] }
   0xb   :  { %v240_v41 = vmul.f32 40.0, %v454_v40  ;;  %vm244_vm5 = vweird.f32 %v454_v40 }
   0xd   :  { %v241_v42 = vsub.f32 1.0, %v240_v41 }
   0xf   :  { %v242_v43 = vmul.f32 %v454_v40, %v241_v42 }
  0x11   :  { %v243_v44 = vadd.f32 %v454_v40, %v242_v43 }
  0x13   :  { %v584_v45 = vsel %vm244_vm5, %v454_v40, %v243_v44 }
  0x76   :  { %v133_v13 = vpop.permute.xlu1 %132 }
  0x80   :  { %v88_v6 = vpop.f32.mrf.mxu1 }
  0x81   :  { %117 = vrot.lane.b32.xlu0 %v88_v6, %s460_s26  ;;  %v440_v6 = vld [vmem:[%s641_s8 + $0x10] sm:$0xff] }
  0x82   :  { %v63_v10 = vpop.f32.mrf.mxu0 }
  0x86   :  { %v113_v7 = vpop.f32.mrf.mxu2 }
  0x89   :  { %122 = vrot.lane.b32.xlu0 %v113_v7, %s461_s3 }
  0xf3   :  { %v118_v9 = vpop.permute.xlu0 %117 }
  0xf4   :  { %v120_v11 = vadd.f32 %v118_v9, %v63_v10 }
  0xfb   :  { %v123_v12 = vpop.permute.xlu0 %122 }
  0xfc   :  { %v125_v14 = vadd.f32 %v123_v12, %v120_v11 }
  0xfe   :  { %v135_v16 = vadd.f32 %v133_v13, %v125_v14 }
 0x100   :  { %v137_v17 = vmul.f32 %v451_v15, %v135_v16 }
 0x102   :  { %139 = vst.msk [vmem:[#allocation2 + $0x4] sm:$0xf] %vm138_vm2, %v137_v17 }
 0x103   :  { %141 = vst.msk [vmem:[#allocation2 + $0x4] sm:$0xf] %vm140_vm3, %v462_v18 }
 0x10a   :  { %v142_v21 = vld [vmem:[#allocation2] sm:$0xff] }
 0x10b   :  { %187 = vmatpush.msrb.mxu0 %v142_v21  ;;  %212 = vmatpush.msrb.mxu1 %v142_v21 }
 0x10c   :  { %434 = vmatmul.msk.f32.vlgmr.msrb.gmra.mxu0 %vm42_vm0, %v433_v19  ;;  %436 = vmatmul.msk.f32.vlgmr.msrb.gmra.mxu1 %vm42_vm0, %v435_v20 }
 0x10d   :  { %162 = vmatpush.msra.mxu3 %v142_v21  ;;  %v378_v21 = vld [vmem:[%s642_s10] sm:$0xff] }
 0x10e   :  { %432 = vmatmul.msk.f32.vlgmr.msra.gmra.mxu3 %vm42_vm0, %v143_v22 }
 0x189   :  { %v189_v23 = vpop.f32.mrf.mxu0  ;;  %v214_v24 = vpop.f32.mrf.mxu1 }
 0x18a   :  { %218 = vrot.lane.b32.xlu1 %v189_v23, %s460_s26  ;;  %223 = vrot.lane.b32.xlu2 %v214_v24, %s461_s3 }
 0x191   :  { %v164_v27 = vpop.f32.mrf.mxu3 }
 0x192   :  { %229 = vrot.lane.b32.xlu2 %v452_v25, %s460_s26 }
 0x19a   :  { %269 = vperm.xlu2 %449, %v233_v32  }
 0x1a2   :  { %275 = vperm.xlu2 %449, %v234_v37  }
 0x1e4   :  { %v224_v26 = vpop.permute.xlu2 %223 }
 0x1ec   :  { %v570_v30 = vpop.permute.xlu2 %229 }
 0x1f4   :  { %v270_v57 = vpop.permute.xlu2 %269 }
 0x1fc   :  { %v219_v28 = vpop.permute.xlu1 %218  ;;  %v276_v0 = vpop.permute.xlu2 %275 }
 0x1fd   :  { %v221_v29 = vadd.f32 %v219_v28, %v164_v27 }
 0x1ff   :  { %v226_v31 = vadd.f32 %v224_v26, %v221_v29 }
 0x201   :  { %v232_v33 = vmul.f32 %v570_v30, %v226_v31 }
 0x203   :  { %v236_v34 = vsel %vm235_vm4, %v232_v33, 0.0  ;;  %v247_v35 = vmul.f32 %v232_v33, %v232_v33 }
 0x204   :  { %237 = vadd.xlane.f32.xlu0 %v236_v34 }
 0x205   :  { %v248_v36 = vsel %vm235_vm4, %v247_v35, 0.0 }
 0x206   :  { %249 = vadd.xlane.f32.xlu1 %v248_v36 }
 0x21f   :  { %405 = vperm.xlu1 %448, %v377_v38  }
 0x277   :  { %v238_v46 = vpop.xlane.xlu0 %237 }
 0x278   :  { %v246_v47 = vmul.f32 %v584_v45, %v238_v46 }
 0x279   :  { %v250_v48 = vpop.xlane.xlu1 %249 }
 0x27a   :  { %v252_v49 = vmul.f32 %v246_v47, %v246_v47  ;;  %v251_v50 = vmul.f32 %v250_v48, %v584_v45  ;;  %v265_v60 = vsub.f32 %v232_v33, %v246_v47 }
 0x27c   :  { %v253_v51 = vsub.f32 %v251_v50, %v252_v49 }
 0x27e   :  { %v254_v52 = vadd.f32 1e-05, %v253_v51 }
 0x280   :  { %455 = vrsqrt.f32 %v254_v52  ;;  %vm261_vm7 = vweird.f32 %v254_v52 }
 0x286   :  { %v456_v53 = vpop.eup %455 }
 0x287   :  { %v256_v54 = vmul.f32 %v456_v53, %v254_v52  ;;  %vm262_vm6 = vweird.f32 %v456_v53 }
 0x288   :  { %vm263_vm8 = vmor %vm261_vm7, %vm262_vm6 }
 0x289   :  { %v257_v55 = vmul.f32 %v456_v53, %v256_v54 }
 0x28b   :  { %v258_v56 = vmul.f32 0.5, %v257_v55 }
 0x28d   :  { %v259_v58 = vsub.f32 1.5, %v258_v56 }
 0x28f   :  { %v260_v59 = vmul.f32 %v456_v53, %v259_v58 }
 0x291   :  { %v264_v61 = vsel %vm263_vm8, %v456_v53, %v260_v59  ;;  %v406_v38 = vpop.permute.xlu1 %405 }
 0x292   :  { %v266_v62 = vmul.f32 %v265_v60, %v264_v61 }
 0x294   :  { %v272_v63 = vmul.f32 %v270_v57, %v266_v62 }
 0x296   :  { %v278_v1 = vadd.f32 %v276_v0, %v272_v63 }
 0x298   :  { %v279_v2 = vmax.f32 %v278_v1, 0.0 }
 0x29a   :  { %v280_v3 = vmul.f32 %v279_v2, %v570_v30 }
 0x29c   :  { %282 = vrot.lane.b32.xlu2 %v280_v3, %s464_s6 }
 0x2f6   :  { %v283_v4 = vpop.permute.xlu2 %282 }
 0x2f7   :  { %286 = vst.msk [vmem:[#allocation3] sm:$0xff] %vm285_vm9, %v283_v4 }
 0x2f8   :  { %288 = vst.msk [vmem:[#allocation3] sm:$0xff] %vm287_vm10, %v462_v18 }
 0x2f9   :  { %290 = vst.msk [vmem:[#allocation3] sm:$0xff] %vm289_vm11, %v462_v18 }
 0x300   :  { %v291_v7 = vld [vmem:[#allocation3] sm:$0xff] }
 0x301   :  { %336 = vmatpush.msrb.mxu3 %v291_v7  ;;  %361 = vmatpush.msra.mxu0 %v291_v7 }
 0x302   :  { %439 = vmatmul.msk.f32.vlgmr.msrb.gmra.mxu3 %vm42_vm0, %v438_v5  ;;  %441 = vmatmul.msk.f32.vlgmr.msra.gmra.mxu0 %vm42_vm0, %v440_v6 }
 0x303   :  { %311 = vmatpush.msrb.mxu2 %v291_v7 }
 0x304   :  { %437 = vmatmul.msk.f32.vlgmr.msrb.gmra.mxu2 %vm42_vm0, %v292_v8 }
 0x37f   :  { %v363_v10 = vpop.f32.mrf.mxu0 }
 0x385   :  { %v338_v9 = vpop.f32.mrf.mxu3 }
 0x386   :  { %367 = vrot.lane.b32.xlu2 %v338_v9, %s460_s26 }
 0x387   :  { %v313_v12 = vpop.f32.mrf.mxu2 }
 0x38e   :  { %372 = vrot.lane.b32.xlu2 %v363_v10, %s461_s3 }
 0x3e0   :  { %v368_v11 = vpop.permute.xlu2 %367 }
 0x3e1   :  { %v370_v13 = vadd.f32 %v368_v11, %v313_v12 }
 0x3e8   :  { %v373_v14 = vpop.permute.xlu2 %372 }
 0x3e9   :  { %v375_v15 = vadd.f32 %v373_v14, %v370_v13 }
 0x3eb   :  { %v376_v16 = vmul.f32 %v375_v15, %v570_v30 }
 0x3ed   :  { %v379_v17 = vsel %vm235_vm4, %v376_v16, 0.0  ;;  %v383_v19 = vmul.f32 %v376_v16, %v376_v16 }
 0x3ee   :  { %380 = vadd.xlane.f32.xlu2 %v379_v17 }
 0x3ef   :  { %v384_v20 = vsel %vm235_vm4, %v383_v19, 0.0 }
 0x3f0   :  { %385 = vadd.xlane.f32.xlu0 %v384_v20 }
 0x404   :  { %411 = vperm.xlu0 %450, %v378_v21  }
 0x461   :  { %v381_v22 = vpop.xlane.xlu2 %380 }
 0x462   :  { %v382_v23 = vmul.f32 %v381_v22, %v584_v45 }
 0x463   :  { %v386_v24 = vpop.xlane.xlu0 %385 }
 0x464   :  { %v388_v25 = vmul.f32 %v382_v23, %v382_v23  ;;  %v387_v26 = vmul.f32 %v386_v24, %v584_v45  ;;  %v401_v35 = vsub.f32 %v376_v16, %v382_v23 }
 0x466   :  { %v389_v27 = vsub.f32 %v387_v26, %v388_v25 }
 0x468   :  { %v390_v28 = vadd.f32 1e-05, %v389_v27 }
 0x46a   :  { %457 = vrsqrt.f32 %v390_v28  ;;  %vm397_vm13 = vweird.f32 %v390_v28 }
 0x470   :  { %v458_v29 = vpop.eup %457 }
 0x471   :  { %v392_v30 = vmul.f32 %v458_v29, %v390_v28  ;;  %vm398_vm12 = vweird.f32 %v458_v29 }
 0x472   :  { %vm399_vm14 = vmor %vm397_vm13, %vm398_vm12 }
 0x473   :  { %v393_v31 = vmul.f32 %v458_v29, %v392_v30 }
 0x475   :  { %v394_v32 = vmul.f32 0.5, %v393_v31 }
 0x476   :  { %v412_v39 = vpop.permute.xlu0 %411 }
 0x477   :  { %v395_v33 = vsub.f32 1.5, %v394_v32 }
 0x479   :  { %v396_v34 = vmul.f32 %v458_v29, %v395_v33 }
 0x47b   :  { %v400_v36 = vsel %vm399_vm14, %v458_v29, %v396_v34 }
 0x47c   :  { %v402_v37 = vmul.f32 %v401_v35, %v400_v36 }
 0x47e   :  { %v408_v40 = vmul.f32 %v406_v38, %v402_v37 }
 0x480   :  { %v414_v41 = vadd.f32 %v412_v39, %v408_v40 }
 0x482   :  { %v415_v42 = vmax.f32 %v414_v41, 0.0 }
 0x484   :  { %417 = vrot.lane.b32.xlu1 %v415_v42, %s464_s6 }
 0x4f6   :  { %v418_v43 = vpop.permute.xlu1 %417 }
 0x4f7   :  { %420 = vst.msk [vmem:[%s643_s11] sm:$0xff] %vm285_vm9, %v418_v43 }
 0x4f8   :  { %421 = vst.msk [vmem:[%s643_s11] sm:$0xff] %vm287_vm10, %v462_v18 }
 0x4f9   :  { %422 = vst.msk [vmem:[%s643_s11] sm:$0xff] %vm289_vm11, %v462_v18 }

</bundles_post_ra>
